<compile_context>
chip_gen: v6e
topology: v6e:2x2x1
jax: 0.10.0
libtpu: 0.0.40
codegen_flags: <defaults>
</compile_context>

<pallas_src>
import jax
import jax.numpy as jnp
from jax.experimental import pallas as pl
from jax.experimental.pallas import tpu as pltpu

IN_FEATURES = 1 * 28 * 28   # 784
HIDDEN = 100
HIDDEN_PAD = 128            # lane-aligned hidden width (zero-padded)
OUT_FEATURES = 10
TILE_B_MAX = 512            # batch tile (multiple of 8); mem-bound sweet spot


def _round_up(n, m):
    return ((n + m - 1) // m) * m


def mlp_kernel(x_ref, w1_ref, b1_ref, w2_ref, b2_ref, o_ref):
    # Cast activations to bf16 in-kernel (native MXU path); accumulate in f32.
    x = x_ref[...].astype(jnp.bfloat16)
    # fc1: (TB, 784)bf16 @ (784, 128)bf16 -> f32 accum, + bias, ReLU
    h = jnp.dot(x, w1_ref[...], preferred_element_type=jnp.float32)
    h = jnp.maximum(h + b1_ref[...], 0.0)
    # fc2: (TB, 128)bf16 @ (128, 10)bf16 -> f32 accum, + bias
    out = jnp.dot(h.astype(jnp.bfloat16), w2_ref[...],
                  preferred_element_type=jnp.float32)
    o_ref[...] = (out + b2_ref[...]).astype(o_ref.dtype)


def mnist_forward(image, w1, b1, w2, b2):
    """image: (B, 1, 28, 28) float32 -> logits (B, 10) float32."""
    B = image.shape[0]
    x = image.reshape(B, IN_FEATURES)          # free reshape, stays f32

    # Pad HIDDEN 100 -> 128 (zero columns of w1 / entries of b1 / rows of w2).
    hp = HIDDEN_PAD - HIDDEN
    w1p = jnp.pad(w1, ((0, 0), (0, hp))).astype(jnp.bfloat16)
    b1p = jnp.pad(b1, (0, hp)).reshape(1, HIDDEN_PAD).astype(jnp.float32)
    w2p = jnp.pad(w2, ((0, hp), (0, 0))).astype(jnp.bfloat16)
    b2p = b2.reshape(1, OUT_FEATURES).astype(jnp.float32)

    # Batch tile: multiple of 8 (sublane), capped at TILE_B_MAX.
    tb = min(TILE_B_MAX, _round_up(B, 8))
    grid = (pl.cdiv(B, tb),)                   # ragged last tile handled by Pallas

    flops = 2 * B * (IN_FEATURES * HIDDEN_PAD + HIDDEN_PAD * OUT_FEATURES)
    bytes_accessed = (
        B * IN_FEATURES * 4                       # x (f32, read once)
        + IN_FEATURES * HIDDEN_PAD * 2            # w1 (bf16)
        + HIDDEN_PAD * OUT_FEATURES * 2           # w2 (bf16)
        + HIDDEN_PAD * 4 + OUT_FEATURES * 4       # biases (f32)
        + B * OUT_FEATURES * 4                    # logits (f32)
    )

    out = pl.pallas_call(
        mlp_kernel,
        out_shape=jax.ShapeDtypeStruct((B, OUT_FEATURES), jnp.float32),
        grid=grid,
        in_specs=[
            pl.BlockSpec((tb, IN_FEATURES), lambda i: (i, 0)),           # x tile
            pl.BlockSpec((IN_FEATURES, HIDDEN_PAD), lambda i: (0, 0)),   # w1 (resident)
            pl.BlockSpec((1, HIDDEN_PAD), lambda i: (0, 0)),             # b1 (resident)
            pl.BlockSpec((HIDDEN_PAD, OUT_FEATURES), lambda i: (0, 0)),  # w2 (resident)
            pl.BlockSpec((1, OUT_FEATURES), lambda i: (0, 0)),           # b2 (resident)
        ],
        out_specs=pl.BlockSpec((tb, OUT_FEATURES), lambda i: (i, 0)),
        compiler_params=pltpu.CompilerParams(
            dimension_semantics=("parallel",)),
        cost_estimate=pl.CostEstimate(
            flops=flops, transcendentals=0, bytes_accessed=bytes_accessed),
    )(x, w1p, b1p, w2p, b2p)

    return out


def init_params(key):
    """Deterministic init matching nn.Linear's U(-1/sqrt(fan_in), 1/sqrt(fan_in))."""
    k1, k2, k3, k4 = jax.random.split(key, 4)
    bound1 = 1.0 / jnp.sqrt(IN_FEATURES)
    bound2 = 1.0 / jnp.sqrt(HIDDEN)
    # stored as (in_features, out_features) for x @ W
    w1 = jax.random.uniform(k1, (IN_FEATURES, HIDDEN), jnp.float32, -bound1, bound1)
    b1 = jax.random.uniform(k2, (HIDDEN,), jnp.float32, -bound1, bound1)
    w2 = jax.random.uniform(k3, (HIDDEN, OUT_FEATURES), jnp.float32, -bound2, bound2)
    b2 = jax.random.uniform(k4, (OUT_FEATURES,), jnp.float32, -bound2, bound2)
    return w1, b1, w2, b2


if __name__ == "__main__":
    key = jax.random.PRNGKey(0)
    kx, kp = jax.random.split(key)

    B = 4
    # Emulate a normalized grayscale MNIST batch (post transforms): NCHW.
    image = jax.random.normal(kx, (B, 1, 28, 28), jnp.float32)
    w1, b1, w2, b2 = init_params(kp)

    logits = mnist_forward(image, w1, b1, w2, b2)
    logits = jax.block_until_ready(logits)
    assert logits.shape == (B, OUT_FEATURES)

    # Reference in plain JAX using the same bf16-activation / f32-accum math
    # (the bf16 cast is the only intended numerical deviation from PyTorch f32).
    x = image.reshape(B, IN_FEATURES).astype(jnp.bfloat16)
    w1b = w1.astype(jnp.bfloat16)
    w2b = w2.astype(jnp.bfloat16)
    h = jnp.maximum(
        jnp.dot(x, w1b, preferred_element_type=jnp.float32) + b1, 0.0)
    ref = jnp.dot(h.astype(jnp.bfloat16), w2b,
                  preferred_element_type=jnp.float32) + b2
    assert jnp.allclose(logits, ref, atol=1e-2, rtol=1e-2), (
        float(jnp.max(jnp.abs(logits - ref))))

    print("KERNEL_OK")
</pallas_src>

<mosaic_0001>
module attributes {stable_mosaic.version = 11 : i64} {
  func.func @mlp_kernel(%arg0: i32, %arg1: memref<8x784xf32, #tpu.memory_space<vmem>>, %arg2: memref<784x128xbf16, #tpu.memory_space<vmem>>, %arg3: memref<1x128xf32, #tpu.memory_space<vmem>>, %arg4: memref<128x10xbf16, #tpu.memory_space<vmem>>, %arg5: memref<1x10xf32, #tpu.memory_space<vmem>>, %arg6: memref<8x10xf32, #tpu.memory_space<vmem>>) attributes {dimension_semantics = [#tpu.dimension_semantics<parallel>], iteration_bounds = array<i64: 1>, scalar_prefetch = 0 : i64, scratch_operands = 0 : i64, tpu.core_type = #tpu.core_type<tc>, window_params = [{transform_indices = @transform_0, window_bounds = array<i64: 8, 784>}, {pipeline_mode = #tpu.pipeline_mode<synchronous>, transform_indices = @transform_1, window_bounds = array<i64: 784, 128>}, {pipeline_mode = #tpu.pipeline_mode<synchronous>, transform_indices = @transform_2, window_bounds = array<i64: 1, 128>}, {pipeline_mode = #tpu.pipeline_mode<synchronous>, transform_indices = @transform_3, window_bounds = array<i64: 128, 10>}, {pipeline_mode = #tpu.pipeline_mode<synchronous>, transform_indices = @transform_4, window_bounds = array<i64: 1, 10>}, {transform_indices = @transform_5, window_bounds = array<i64: 8, 10>}]} {
    %c0 = arith.constant 0 : index
    %c0_0 = arith.constant 0 : index
    %0 = vector.load %arg1[%c0, %c0_0] : memref<8x784xf32, #tpu.memory_space<vmem>>, vector<8x784xf32>
    %1 = arith.truncf %0 : vector<8x784xf32> to vector<8x784xbf16>
    %c0_1 = arith.constant 0 : index
    %c0_2 = arith.constant 0 : index
    %2 = vector.load %arg2[%c0_1, %c0_2] : memref<784x128xbf16, #tpu.memory_space<vmem>>, vector<784x128xbf16>
    %cst = arith.constant dense<0.000000e+00> : vector<8x128xf32>
    %3 = tpu.matmul %1, %2, %cst {dimension_numbers = #tpu.dot_dimension_numbers<[1], [0], [0], [1], [0, 0, 1, 1], [], []>} : vector<8x784xbf16>, vector<784x128xbf16>, vector<8x128xf32> -> vector<8x128xf32>
    %c0_3 = arith.constant 0 : index
    %c0_4 = arith.constant 0 : index
    %4 = vector.load %arg3[%c0_3, %c0_4] : memref<1x128xf32, #tpu.memory_space<vmem>>, vector<1x128xf32>
    %5 = vector.broadcast %4 : vector<1x128xf32> to vector<8x128xf32>
    %6 = arith.addf %3, %5 : vector<8x128xf32>
    %cst_5 = arith.constant 0.000000e+00 : f32
    %7 = vector.broadcast %cst_5 : f32 to vector<8x128xf32>
    %8 = arith.maximumf %6, %7 : vector<8x128xf32>
    %9 = arith.truncf %8 : vector<8x128xf32> to vector<8x128xbf16>
    %c0_6 = arith.constant 0 : index
    %c0_7 = arith.constant 0 : index
    %10 = vector.load %arg4[%c0_6, %c0_7] : memref<128x10xbf16, #tpu.memory_space<vmem>>, vector<128x10xbf16>
    %cst_8 = arith.constant dense<0.000000e+00> : vector<8x10xf32>
    %11 = tpu.matmul %9, %10, %cst_8 {dimension_numbers = #tpu.dot_dimension_numbers<[1], [0], [0], [1], [0, 0, 1, 1], [], []>} : vector<8x128xbf16>, vector<128x10xbf16>, vector<8x10xf32> -> vector<8x10xf32>
    %c0_9 = arith.constant 0 : index
    %c0_10 = arith.constant 0 : index
    %12 = vector.load %arg5[%c0_9, %c0_10] : memref<1x10xf32, #tpu.memory_space<vmem>>, vector<1x10xf32>
    %13 = vector.broadcast %12 : vector<1x10xf32> to vector<8x10xf32>
    %14 = arith.addf %11, %13 : vector<8x10xf32>
    %c0_11 = arith.constant 0 : index
    %c0_12 = arith.constant 0 : index
    %15 = vector.load %arg6[%c0_11, %c0_12] : memref<8x10xf32, #tpu.memory_space<vmem>>, vector<8x10xf32>
    tpu.vector_store %arg6[%c0_11, %c0_12], %14 {strides = array<i32>} : memref<8x10xf32, #tpu.memory_space<vmem>>, vector<8x10xf32>,
    return
  }
  func.func @transform_0(%arg0: i32) -> (i32, i32) {
    %c0_i32 = arith.constant 0 : i32
    %c0_i32_0 = arith.constant 0 : i32
    return %arg0, %c0_i32 : i32, i32
  }
  func.func @transform_1(%arg0: i32) -> (i32, i32) {
    %c0_i32 = arith.constant 0 : i32
    %c0_i32_0 = arith.constant 0 : i32
    %c0_i32_1 = arith.constant 0 : i32
    return %c0_i32, %c0_i32_0 : i32, i32
  }
  func.func @transform_2(%arg0: i32) -> (i32, i32) {
    %c0_i32 = arith.constant 0 : i32
    %c0_i32_0 = arith.constant 0 : i32
    %c0_i32_1 = arith.constant 0 : i32
    return %c0_i32, %c0_i32_0 : i32, i32
  }
  func.func @transform_3(%arg0: i32) -> (i32, i32) {
    %c0_i32 = arith.constant 0 : i32
    %c0_i32_0 = arith.constant 0 : i32
    %c0_i32_1 = arith.constant 0 : i32
    return %c0_i32, %c0_i32_0 : i32, i32
  }
  func.func @transform_4(%arg0: i32) -> (i32, i32) {
    %c0_i32 = arith.constant 0 : i32
    %c0_i32_0 = arith.constant 0 : i32
    %c0_i32_1 = arith.constant 0 : i32
    return %c0_i32, %c0_i32_0 : i32, i32
  }
  func.func @transform_5(%arg0: i32) -> (i32, i32) {
    %c0_i32 = arith.constant 0 : i32
    %c0_i32_0 = arith.constant 0 : i32
    return %arg0, %c0_i32 : i32, i32
  }
}

</mosaic_0001>

<bundles_post_ra>
// kernel: tpu_custom_call.1
= control target key start
LH: loop header
LB: loop body
LE: loop exit
PB: predicated region body
PF: predicated region fallthrough
CT: control target
= control target key end

     0   :  { %10 = vsyncpa [#allocation3], 0  ;;  %s1160_s0 = inlined_call_operand.vmem [shape: f32[4,784], index: 0, kind: input, shape index: {}]   ;;  %s1161_s1 = inlined_call_operand.hbm [shape: bf16[784,128], index: 1, kind: input, shape index: {}]   ;;  %s1162_s2 = inlined_call_operand.vmem [shape: f32[1,128], index: 2, kind: input, shape index: {}]   ;;  %s1163_s3 = inlined_call_operand.vmem [shape: bf16[128,10], index: 3, kind: input, shape index: {}]   ;;  %s1164_s4 = inlined_call_operand.vmem [shape: f32[1,10], index: 4, kind: input, shape index: {}]   ;;  %s1165_s5 = inlined_call_operand.hbm [shape: f32[4,10], index: 5, kind: output, shape index: {}]  }
   0x1   :  { %11 = vsyncpa [#allocation4], 0  ;;  %s1048_s18 = smov [#allocation2]  }
   0x2   :  { %s19_s19 = sshll.u32 %s1048_s18, 4  ;;  %s20_s19 = int_to_ptr.vmem [resolvable:$true] %s19_s19 }
   0x3   :  { %s1012_s20 = scalar_lea.vmem %s20_s19, 6272  ;;  %p1017_p1 = scmp.lt.s32.totalorder %s20_s19, %s20_s19 }
   0x4   :  { %p1013_p0 = scmp.ne.s32.totalorder %s20_s19, %s1012_s20  ;;  %p1018_p2 = scmp.lt.s32.totalorder %s1012_s20, %s1012_s20 }
   0x6   :  { %p1019_p3 = por %p1018_p2, %p1017_p1 }
   0x8   :  { %p1020_p4 = pnand %p1019_p3, %p1013_p0 }
   0xa   :  { %1023 = shalt.err (!%p1020_p4)
}
   0xb   :  { %s1049_s21 = smov 64   ;;  %s1050_s22 = smov 4  }
   0xc   :  { %25 = dma.hbm_to_vmem [thread:$0]  %s1161_s1, 6272, %s20_s19, [#allocation3], %s1049_s21, %s1049_s21, %s1050_s22  }
   0xd   :  { %1044 = dma.done.wait [#allocation3], 6272  }
   0xe   :  { %1045 = vsyncadd [#allocation3], 4294961024  ;;  %v937_v0 = vld [vmem:[#allocation2 + $0x78] sm:$0xff]   ;;  %v941_v4 = vld [vmem:[#allocation2 + $0x70] sm:$0xff]   ;;  %v1051_v43 = vmov 0.0   ;;  %vm1052_vm0 = vmmov 0  }
   0xf   :  { %v938_v1 = vld [vmem:[#allocation2 + $0x38] sm:$0xff]   ;;  %828 = vmatprep.subr.bf16.mxu0 %v937_v0  ;;  %v942_v5 = vld [vmem:[#allocation2 + $0x30] sm:$0xff]   ;;  %v945_v8 = vld [vmem:[#allocation2 + $0x68] sm:$0xff]   ;;  %vm472_vm1 = vcmask 130048   ;;  %vm749_vm2 = vcmask 80896  }
  0x10   :  { %v939_v2 = vld [vmem:[#allocation2 + $0xf8] sm:$0xff]   ;;  %829 = vmatpush3.bf16.msra.mxu0 %v938_v1  ;;  %v943_v6 = vld [vmem:[#allocation2 + $0xf0] sm:$0xff]   ;;  %v946_v9 = vld [vmem:[#allocation2 + $0x28] sm:$0xff]  }
  0x11   :  { %v940_v3 = vld [vmem:[#allocation2 + $0xb8] sm:$0xff]   ;;  %850 = vmatprep.subr.bf16.mxu1 %v939_v2  ;;  %830 = vmatprep.subr.bf16.mxu0 %v941_v4  ;;  %v944_v7 = vld [vmem:[#allocation2 + $0xb0] sm:$0xff]   ;;  %v947_v10 = vld [vmem:[#allocation2 + $0xe8] sm:$0xff]  }
  0x12   :  { %851 = vmatpush3.bf16.msra.mxu1 %v940_v3  ;;  %v948_v11 = vld [vmem:[#allocation2 + $0xa8] sm:$0xff]   ;;  %v949_v12 = vld [vmem:[#allocation2 + $0x60] sm:$0xff]   ;;  %v953_v16 = vld [vmem:[#allocation2 + $0x58] sm:$0xff]  }
  0x13   :  { %852 = vmatprep.subr.bf16.mxu1 %v943_v6  ;;  %v950_v13 = vld [vmem:[#allocation2 + $0x20] sm:$0xff]   ;;  %v954_v17 = vld [vmem:[#allocation2 + $0x18] sm:$0xff]   ;;  %v957_v20 = vld [vmem:[#allocation2 + $0x50] sm:$0xff]  }
  0x14   :  { %831 = vmatpush3.bf16.msra.mxu0 %v942_v5  ;;  %v951_v14 = vld [vmem:[#allocation2 + $0xe0] sm:$0xff]   ;;  %v955_v18 = vld [vmem:[#allocation2 + $0xd8] sm:$0xff]   ;;  %v958_v21 = vld [vmem:[#allocation2 + $0x10] sm:$0xff]  }
  0x15   :  { %832 = vmatprep.subr.bf16.mxu0 %v945_v8  ;;  %v952_v15 = vld [vmem:[#allocation2 + $0xa0] sm:$0xff]   ;;  %v956_v19 = vld [vmem:[#allocation2 + $0x98] sm:$0xff]   ;;  %v959_v22 = vld [vmem:[#allocation2 + $0xd0] sm:$0xff]  }
  0x16   :  { %853 = vmatpush3.bf16.msra.mxu1 %v944_v7  ;;  %v960_v23 = vld [vmem:[#allocation2 + $0x90] sm:$0xff]   ;;  %v961_v24 = vld [vmem:[#allocation2 + $0x48] sm:$0xff]   ;;  %v965_v28 = vld [vmem:[#allocation2 + $0x40] sm:$0xff]  }
  0x17   :  { %854 = vmatprep.subr.bf16.mxu1 %v947_v10  ;;  %v962_v25 = vld [vmem:[#allocation2 + $0x8] sm:$0xff]   ;;  %v966_v29 = vld [vmem:[#allocation2] sm:$0xff]   ;;  %v972_v36 = vld [vmem:[#allocation2 + $0x178] sm:$0xff]  }
  0x18   :  { %833 = vmatpush3.bf16.msra.mxu0 %v946_v9  ;;  %v963_v26 = vld [vmem:[#allocation2 + $0xc8] sm:$0xff]   ;;  %v967_v30 = vld [vmem:[#allocation2 + $0xc0] sm:$0xff]   ;;  %v976_v39 = vld [vmem:[#allocation2 + $0x138] sm:$0xff]  }
  0x19   :  { %834 = vmatprep.subr.bf16.mxu0 %v949_v12  ;;  %v964_v27 = vld [vmem:[#allocation2 + $0x88] sm:$0xff]   ;;  %v968_v31 = vld [vmem:[%s1160_s0] ss:$28 sps:$4 sm:$0xff]   ;;  %v977_v42 = vld [vmem:[#allocation2 + $0x170] sm:$0xff]  }
  0x1a   :  { %855 = vmatpush3.bf16.msra.mxu1 %v948_v11  ;;  %v970_v32 = vld [vmem:[%s1160_s0 + $0x4] ss:$28 sps:$4 sm:$0xff]   ;;  %v66_v33 = vpack.c.bf16 %v968_v31, %v968_v31  ;;  %v975_v38 = vld [vmem:[%s1160_s0 + $0xc] ss:$28 sps:$4 sm:$0xff]   ;;  %v978_v44 = vld [vmem:[#allocation2 + $0x130] sm:$0xff]  }
  0x1b   :  { %856 = vmatprep.subr.bf16.mxu1 %v951_v14  ;;  %v971_v34 = vld [vmem:[#allocation2 + $0x80] sm:$0xff]   ;;  %v67_v35 = vpack.c.bf16 %v970_v32, %v970_v32  ;;  %v69_v41 = vpack.c.bf16 %v975_v38, %v975_v38  ;;  %v979_v45 = vld [vmem:[#allocation2 + $0x168] sm:$0xff]   ;;  %v983_v49 = vld [vmem:[#allocation2 + $0x158] sm:$0xff]  }
  0x1c   :  { %835 = vmatpush3.bf16.msra.mxu0 %v950_v13  ;;  %v973_v37 = vld [vmem:[%s1160_s0 + $0x8] ss:$28 sps:$4 sm:$0xff]   ;;  %v984_v50 = vld [vmem:[#allocation2 + $0x118] sm:$0xff]   ;;  %v985_v51 = vld [vmem:[#allocation2 + $0x150] sm:$0xff]  }
  0x1d   :  { %836 = vmatprep.subr.bf16.mxu0 %v953_v16  ;;  %508 = vmatprep.mubr.bf16.mxu0 %v67_v35  ;;  %v68_v40 = vpack.c.bf16 %v973_v37, %v973_v37  ;;  %v980_v46 = vld [vmem:[#allocation2 + $0x128] sm:$0xff]   ;;  %v981_v47 = vld [vmem:[#allocation2 + $0x160] sm:$0xff]   ;;  %v986_v53 = vld [vmem:[#allocation2 + $0x110] sm:$0xff]  }
  0x1e   :  { %857 = vmatpush3.bf16.msra.mxu1 %v952_v15  ;;  %548 = vmatprep.mubr.bf16.mxu1 %v69_v41  ;;  %v982_v48 = vld [vmem:[#allocation2 + $0x120] sm:$0xff]   ;;  %v994_v54 = vld [vmem:[%s1160_s0 + $0x14] ss:$28 sps:$4 sm:$0xff]   ;;  %v987_v55 = vld [vmem:[#allocation2 + $0x148] sm:$0xff]  }
  0x1f   :  { %858 = vmatprep.subr.bf16.mxu1 %v955_v18  ;;  %v991_v52 = vld [vmem:[#allocation2 + $0x180] sm:$0xff]   ;;  %v995_v56 = vld [vmem:[%s1160_s0 + $0x18] ss:$28 sps:$4 sm:$0xff]   ;;  %v71_v57 = vpack.c.bf16 %v994_v54, %v994_v54  ;;  %v988_v59 = vld [vmem:[#allocation2 + $0x108] sm:$0xff]  }
  0x20   :  { %837 = vmatpush3.bf16.msra.mxu0 %v954_v17  ;;  %v72_v58 = vpack.c.bf16 %v995_v56, %v995_v56  ;;  %v989_v60 = vld [vmem:[#allocation2 + $0x140] sm:$0xff]   ;;  %v992_v61 = vld [vmem:[%s1160_s0 + $0x10] ss:$28 sps:$4 sm:$0xff]   ;;  %v996_v0 = vld [vmem:[%s1163_s3 + $0x38] sm:$0xff]  }
  0x21   :  { %838 = vmatprep.subr.bf16.mxu0 %v957_v20  ;;  %v990_v62 = vld [vmem:[#allocation2 + $0x100] sm:$0xff]   ;;  %v70_v63 = vpack.c.bf16 %v992_v61, %v992_v61  ;;  %v997_v1 = vld [vmem:[%s1163_s3 + $0x30] sm:$0xff]   ;;  %v998_v2 = vld [vmem:[%s1163_s3 + $0x28] sm:$0xff]  }
  0x22   :  { %859 = vmatpush3.bf16.msra.mxu1 %v956_v19  ;;  %v999_v3 = vld [vmem:[%s1163_s3 + $0x20] sm:$0xff]   ;;  %v1000_v4 = vld [vmem:[%s1163_s3 + $0x18] sm:$0xff]   ;;  %v1001_v5 = vld [vmem:[%s1163_s3 + $0x10] sm:$0xff]  }
  0x23   :  { %860 = vmatprep.subr.bf16.mxu1 %v959_v22  ;;  %v1002_v6 = vld [vmem:[%s1163_s3 + $0x8] sm:$0xff]   ;;  %v1003_v7 = vld [vmem:[%s1163_s3] sm:$0xff]  }
  0x24   :  { %839 = vmatpush3.bf16.msra.mxu0 %v958_v21  ;;  %v768_v21 = vld [vmem:[%s1162_s2] ss:$0 sm:$0xff] }
  0x25   :  { %840 = vmatprep.subr.bf16.mxu0 %v961_v24 }
  0x26   :  { %861 = vmatpush3.bf16.msra.mxu1 %v960_v23 }
  0x27   :  { %862 = vmatprep.subr.bf16.mxu1 %v963_v26 }
  0x28   :  { %841 = vmatpush3.bf16.msra.mxu0 %v962_v25 }
  0x29   :  { %842 = vmatprep.subr.bf16.mxu0 %v965_v28 }
  0x2a   :  { %863 = vmatpush3.bf16.msra.mxu1 %v964_v27 }
  0x2b   :  { %864 = vmatprep.subr.bf16.mxu1 %v967_v30 }
  0x2c   :  { %843 = vmatpush3.bf16.msra.mxu0 %v966_v29 }
  0x2d   :  { %872 = vmatprep.subr.bf16.mxu0 %v972_v36 }
  0x2e   :  { %865 = vmatpush3.bf16.msra.mxu1 %v971_v34  ;;  %v819_v34 = vld [vmem:[%s1164_s4] ss:$0 sm:$0xff] }
  0x2f   :  { %509 = vmatmul.mubr.bf16.vlgmr.msra.gmra.mxu0 %v66_v33  ;;  %905 = vmatprep.subr.bf16.mxu1 %v1051_v43 }
  0x30   :  { %873 = vmatpush3.bf16.msra.mxu0 %v976_v39  ;;  %588 = vmatprep.mubr.bf16.mxu0 %v71_v57 }
  0x31   :  { %874 = vmatprep.subr.bf16.mxu0 %v977_v42  ;;  %549 = vmatmul.mubr.bf16.vlgmr.msra.gmra.mxu1 %v68_v40 }
  0x32   :  { %907 = vmatprep.mubr.msk.bf16.mxu1 %vm1052_vm0, %v1051_v43  ;;  %906 = vmatpush3.bf16.msra.mxu1 %v991_v52 }
  0x33   :  { %911 = vmatprep.subr.bf16.mxu1 %v1051_v43 }
  0x34   :  { %875 = vmatpush3.bf16.msra.mxu0 %v978_v44 }
  0x35   :  { %876 = vmatprep.subr.bf16.mxu0 %v979_v45 }
  0x38   :  { %877 = vmatpush3.bf16.msra.mxu0 %v980_v46 }
  0x39   :  { %878 = vmatprep.subr.bf16.mxu0 %v981_v47  ;;  %908 = vmatmul.mubr.msk.bf16.vlgmr.msra.gmra.mxu1 %vm472_vm1, %v72_v58 }
  0x3a   :  { %927 = vmatprep.mubr.msk.bf16.mxu1 %vm1052_vm0, %v1051_v43  ;;  %912 = vmatpush3.bf16.msra.mxu1 %v996_v0 }
  0x3b   :  { %913 = vmatprep.subr.bf16.mxu1 %v1051_v43 }
  0x3c   :  { %879 = vmatpush3.bf16.msra.mxu0 %v982_v48 }
  0x3d   :  { %880 = vmatprep.subr.bf16.mxu0 %v983_v49 }
  0x3e   :  { %914 = vmatpush3.bf16.msra.mxu1 %v997_v1 }
  0x3f   :  { %915 = vmatprep.subr.bf16.mxu1 %v1051_v43 }
  0x40   :  { %881 = vmatpush3.bf16.msra.mxu0 %v984_v50 }
  0x41   :  { %882 = vmatprep.subr.bf16.mxu0 %v985_v51 }
  0x42   :  { %916 = vmatpush3.bf16.msra.mxu1 %v998_v2 }
  0x43   :  { %917 = vmatprep.subr.bf16.mxu1 %v1051_v43 }
  0x44   :  { %883 = vmatpush3.bf16.msra.mxu0 %v986_v53 }
  0x45   :  { %884 = vmatprep.subr.bf16.mxu0 %v987_v55 }
  0x46   :  { %918 = vmatpush3.bf16.msra.mxu1 %v999_v3 }
  0x47   :  { %919 = vmatprep.subr.bf16.mxu1 %v1051_v43 }
  0x48   :  { %885 = vmatpush3.bf16.msra.mxu0 %v988_v59 }
  0x49   :  { %886 = vmatprep.subr.bf16.mxu0 %v989_v60 }
  0x4a   :  { %920 = vmatpush3.bf16.msra.mxu1 %v1000_v4 }
  0x4b   :  { %921 = vmatprep.subr.bf16.mxu1 %v1051_v43 }
  0x4c   :  { %887 = vmatpush3.bf16.msra.mxu0 %v990_v62 }
  0x4e   :  { %922 = vmatpush3.bf16.msra.mxu1 %v1001_v5 }
  0x4f   :  { %589 = vmatmul.mubr.bf16.vlgmr.msra.gmra.mxu0 %v70_v63  ;;  %923 = vmatprep.subr.bf16.mxu1 %v1051_v43 }
  0x52   :  { %924 = vmatpush3.bf16.msra.mxu1 %v1002_v6 }
  0x53   :  { %925 = vmatprep.subr.bf16.mxu1 %v1051_v43 }
  0x56   :  { %926 = vmatpush3.bf16.msra.mxu1 %v1003_v7 }
  0xef   :  { %v844_v8 = vpop.f32.mrf.mxu0 }
  0xf1   :  { %v845_v9 = vpop.f32.mrf.mxu0  ;;  %v866_v10 = vpop.f32.mrf.mxu1 }
  0xf2   :  { %v846_v20 = vadd.f32 %v845_v9, %v844_v8 }
  0xf3   :  { %v847_v11 = vpop.f32.mrf.mxu0  ;;  %v867_v12 = vpop.f32.mrf.mxu1 }
  0xf4   :  { %v511_v22 = vadd.f32 %v846_v20, %v768_v21  ;;  %v868_v23 = vadd.f32 %v867_v12, %v866_v10 }
  0xf5   :  { %v848_v13 = vpop.f32.mrf.mxu0  ;;  %v869_v14 = vpop.f32.mrf.mxu1 }
  0xf6   :  { %v551_v26 = vadd.f32 %v868_v23, %v511_v22 }
  0xf7   :  { %v870_v15 = vpop.f32.mrf.mxu1 }
  0xf9   :  { %v630_v16 = vpop.f32.mrf.mxu1 }
  0xfb   :  { %v909_v17 = vpop.f32.mrf.mxu1 }
  0xfd   :  { %v633_v18 = vpop.f32.mrf.mxu1 }
  0xff   :  { %v910_v19 = vpop.f32.mrf.mxu1 }
 0x10f   :  { %v888_v24 = vpop.f32.mrf.mxu0 }
 0x111   :  { %v889_v25 = vpop.f32.mrf.mxu0 }
 0x112   :  { %v890_v27 = vadd.f32 %v889_v25, %v888_v24 }
 0x113   :  { %v891_v28 = vpop.f32.mrf.mxu0 }
 0x114   :  { %v591_v29 = vadd.f32 %v890_v27, %v551_v26 }
 0x115   :  { %v892_v30 = vpop.f32.mrf.mxu0 }
 0x116   :  { %v631_v31 = vadd.f32 %v630_v16, %v591_v29 }
 0x118   :  { %v636_v32 = vmax.f32 %v631_v31, 0.0 }
 0x11a   :  { %v637_v33 = vpack.c.bf16 %v636_v32, %v636_v32 }
 0x11c   :  { %928 = vmatmul.mubr.bf16.vlgmr.msra.gmra.mxu1 %v637_v33 }
 0x1dc   :  { %v743_v35 = vpop.f32.mrf.mxu1 }
 0x1dd   :  { %v744_v36 = vadd.f32 %v819_v34, %v743_v35 }
 0x1de   :  { %v929_v37 = vpop.f32.mrf.mxu1 }
 0x1df   :  { %750 = vst.msk [vmem:[#allocation5] sm:$0xff] %vm749_vm2, %v744_v36 }
 0x1e0   :  { %v746_v38 = vpop.f32.mrf.mxu1 }
 0x1e2   :  { %v930_v39 = vpop.f32.mrf.mxu1 }
 0x1e3   :  { %755 = vsyncadd [#allocation4], 64  ;;  %s1053_s2 = smov [#allocation5]  }
 0x1e4   :  { %s756_s7 = sshll.u32 %s1053_s2, 4  ;;  %s757_s7 = int_to_ptr.vmem [resolvable:$true] %s756_s7 }
 0x1e5   :  { %s1024_s8 = scalar_lea.vmem %s757_s7, 64  ;;  %s1028_s9 = scalar_lea.vmem %s757_s7, 128 }
 0x1e6   :  { %p1025_p5 = scmp.ne.s32.totalorder %s757_s7, %s1024_s8  ;;  %p1029_p6 = scmp.lt.s32.totalorder %s757_s7, %s757_s7 }
 0x1e7   :  { %p1030_p7 = scmp.lt.s32.totalorder %s1028_s9, %s1024_s8 }
 0x1e9   :  { %p1031_p8 = por %p1030_p7, %p1029_p6 }
 0x1eb   :  { %p1032_p9 = pnand %p1031_p8, %p1025_p5 }
 0x1ed   :  { %1035 = shalt.err (!%p1032_p9)
}
 0x1ee   :  { %762 = dma.vmem_to_hbm [thread:$0]  %s757_s7, 64, %s1165_s5, [#allocation4], %s1049_s21, %s1049_s21, %s1050_s22  }
 0x1ef   :  { %1046 = dma.done.wait [#allocation4], 128  }
 0x1f0   :  { %1047 = vsyncadd [#allocation4], 4294967168 }
 0x1f1   :  { %766 = vsyncpa [#allocation3], 1 }
 0x1f2   :  { %767 = vsyncpa [#allocation4], 1 }

</bundles_post_ra>
